<compile_context>
chip_gen: v6e
topology: v6e:2x2x1
jax: 0.10.0
libtpu: 0.0.40
codegen_flags: <defaults>
</compile_context>

<pallas_src>
import functools

import jax
import jax.numpy as jnp
import numpy as np
from jax import lax
from jax.experimental import pallas as pl
from jax.experimental.pallas import tpu as pltpu


_INT32_MIN = -2147483648
_INT32_MAX = 2147483647
# murmur3 finalizer constants reinterpreted as int32 (wrapping arithmetic).
_M1 = int(np.array(0x85EBCA6B, dtype=np.uint32).view(np.int32))
_M2 = int(np.array(0xC2B2AE35, dtype=np.uint32).view(np.int32))


# ---------------------------------------------------------------------------
# Portable helpers shared by the kernels and the pure-JAX test reference.
# ---------------------------------------------------------------------------

def _srl(x, n):
    """Logical right shift of an int32 array by a static amount."""
    return lax.shift_right_logical(x, jnp.full_like(x, n))


def _mix32(h):
    """murmur3 finalizer on int32 (wrapping mul): counter-based PRNG step."""
    h = h ^ _srl(h, 16)
    h = h * jnp.int32(_M1)
    h = h ^ _srl(h, 13)
    h = h * jnp.int32(_M2)
    h = h ^ _srl(h, 16)
    return h


def _thresh_valid(H, W, block_size, gamma):
    """(1, H*W) int32: signed threshold on lanes where the Bernoulli draw is
    allowed (row < H-bs+1, col < W-bs+1), INT32_MIN elsewhere.  keep = hash < t
    gives P(keep)=gamma on valid lanes and exactly 0 on invalid lanes without
    any extra bit-mask / validity multiply in the kernel."""
    Hm = H - (block_size - 1)
    Wm = W - (block_size - 1)
    t = int(round(float(gamma) * 4294967296.0)) - 2147483648
    t = max(_INT32_MIN, min(_INT32_MAX, t))
    valid = (np.arange(H)[:, None] < Hm) & (np.arange(W)[None, :] < Wm)
    tv = np.where(valid, t, _INT32_MIN).astype(np.int32)
    return jnp.asarray(tv.reshape(1, H * W))


def _keep_from_hash(gid, seed, tv):
    """0/1 float32 Bernoulli(gamma) draw from the counter hash."""
    return (_mix32(gid ^ seed) < tv).astype(jnp.float32)


def _shift_down(a, d, HW):
    """out[k] = a[k-d] with zero fill for k < d (lane shift, portable)."""
    if d <= 0:
        return a
    z = jnp.zeros((a.shape[0], d), a.dtype)
    return jnp.concatenate([z, a], axis=1)[:, :HW]


def _dilate(keep, *, block_size, W, HW):
    """Separable bs x bs dilation of the flattened (TB, H*W) 0/1 mask:
    dilated[y, x] = max over keep[y-dy, x-dx], dy, dx in [0, bs)."""
    if block_size == 1:
        return keep
    # W axis: unit shifts of the *raw* mask.  Cross-row wrap of a shift by
    # d < bs lands in the previous row's last bs-1 columns, which the valid
    # window forces to zero, so every shifted copy is exact.
    acc = keep
    for d in range(1, block_size):
        acc = jnp.maximum(acc, _shift_down(keep, d, HW))
    # H axis: log-step doubling (ceil(log2(bs)) shifts instead of bs-1).
    # Shifts are whole rows (multiples of W lanes) with an explicit zero
    # prefix, so doubling on the partially-dilated operand stays exact.
    res = acc
    w = 1
    while w < block_size:
        s = min(w, block_size - w)
        res = jnp.maximum(res, _shift_down(res, s * W, HW))
        w += s
    return res


# ---------------------------------------------------------------------------
# Kernels
# ---------------------------------------------------------------------------

def _dilated_mask(seed_ref, tv_ref, *, block_size, W, HW, TB):
    base = pl.program_id(0) * (TB * HW)
    row = lax.broadcasted_iota(jnp.int32, (TB, HW), 0)
    col = lax.broadcasted_iota(jnp.int32, (TB, HW), 1)
    gid = base + row * jnp.int32(HW) + col                # global element counter
    keep = _keep_from_hash(gid, seed_ref[0], tv_ref[...])
    return _dilate(keep, block_size=block_size, W=W, HW=HW)


def _count_kernel(seed_ref, tv_ref, cnt_ref, *, block_size, W, HW, TB):
    written = _dilated_mask(seed_ref, tv_ref,
                            block_size=block_size, W=W, HW=HW, TB=TB)
    ones = jnp.float32(TB * HW) - jnp.sum(written)        # sum(block_mask) this step
    r = lax.broadcasted_iota(jnp.int32, (8, 128), 0)
    c = lax.broadcasted_iota(jnp.int32, (8, 128), 1)
    cnt_ref[...] = jnp.where((r == 0) & (c == 0), ones, 0.0)[None]


def _apply_kernel(seed_ref, scale_ref, tv_ref, x_ref, y_ref, *,
                  block_size, W, HW, TB):
    written = _dilated_mask(seed_ref, tv_ref,
                            block_size=block_size, W=W, HW=HW, TB=TB)
    block_mask = 1.0 - written
    y_ref[...] = ((x_ref[...].astype(jnp.float32) * block_mask)
                  * scale_ref[0]).astype(y_ref.dtype)


# ---------------------------------------------------------------------------
# Host-side planning / wrapper
# ---------------------------------------------------------------------------

def _vmem_limit_bytes():
    """32 MiB on 64-MiB-VMEM parts (v7x) or unknown backends, 64 MiB on the
    128-MiB-VMEM generations (v5e/v6e)."""
    try:
        cap = int(pltpu.get_tpu_info().vmem_capacity_bytes)
    except Exception:
        cap = 0
    return (64 << 20) if cap >= (96 << 20) else (32 << 20)


def _pick_tb(bc, HW, itemsize, vmem_limit):
    """Planes per grid step: a divisor of bc that is a multiple of the sublane
    packing factor, VMEM-budgeted, preferring >= 2 grid steps."""
    pack = 8 * max(1, 4 // int(itemsize))          # 8 f32, 16 bf16, 32 int8/fp8
    per_plane = HW * (4 * int(itemsize) + 48)      # dbl-buffered x/y + f32/i32 temps
    cap = max(1, (vmem_limit // 2) // per_plane)
    divs = [t for t in range(pack, bc + 1, pack) if bc % t == 0]
    if not divs:
        return bc                                  # bc < pack (full-dim block)
    under = [t for t in divs if t <= cap] or [divs[0]]
    multi = [t for t in under if bc // t >= 2]     # keep >= 2 steps when possible
    return max(multi) if multi else max(under)


def _compiler_params(vmem_limit):
    return pltpu.CompilerParams(dimension_semantics=("parallel",),
                                vmem_limit_bytes=int(vmem_limit))


def _derive_seed(key):
    return jax.random.randint(key, (1,), _INT32_MIN, _INT32_MAX, dtype=jnp.int32)


def dropblock(x, gamma, *, block_size, key, training=True):
    """DropBlock forward pass.  `gamma` must be a static Python float."""
    if not training:
        return x
    B, C, H, W = x.shape
    bs = int(block_size)
    if H - (bs - 1) < 1 or W - (bs - 1) < 1:
        raise ValueError("block_size too large for the feature map")
    bc, HW = B * C, H * W
    vmem_limit = _vmem_limit_bytes()
    TB = _pick_tb(bc, HW, jnp.dtype(x.dtype).itemsize, vmem_limit)
    steps = bc // TB
    # TODO(synk): if H*W is not a multiple of 128 (e.g. 14x14 stages), pad the
    # flattened plane to the next multiple of 128 for fully lane-dense stores.
    tv = _thresh_valid(H, W, bs, float(gamma))
    seed = _derive_seed(key)
    xf = x.reshape(bc, HW)                          # free row-major flatten
    params = _compiler_params(vmem_limit)

    # Pass 1: count-only (no x traffic) -> global sum of the block mask.
    cnt = pl.pallas_call(
        functools.partial(_count_kernel, block_size=bs, W=W, HW=HW, TB=TB),
        out_shape=jax.ShapeDtypeStruct((steps, 8, 128), jnp.float32),
        grid=(steps,),
        in_specs=[pl.BlockSpec(memory_space=pltpu.MemorySpace.SMEM),
                  pl.BlockSpec((1, HW), lambda i: (0, 0))],
        out_specs=pl.BlockSpec((1, 8, 128), lambda i: (i, 0, 0)),
        compiler_params=params,
    )(seed, tv)
    count_ones = jnp.sum(cnt)
    # NOTE: division by zero when everything drops matches the PyTorch module.
    scale = (jnp.float32(bc * H * W) / count_ones).reshape(1)

    # Pass 2: regenerate the same mask on-chip, write x * block_mask * scale.
    y = pl.pallas_call(
        functools.partial(_apply_kernel, block_size=bs, W=W, HW=HW, TB=TB),
        out_shape=jax.ShapeDtypeStruct((bc, HW), x.dtype),
        grid=(steps,),
        in_specs=[pl.BlockSpec(memory_space=pltpu.MemorySpace.SMEM),   # seed
                  pl.BlockSpec(memory_space=pltpu.MemorySpace.SMEM),   # scale
                  pl.BlockSpec((1, HW), lambda i: (0, 0)),             # thresh/valid
                  pl.BlockSpec((TB, HW), lambda i: (i, 0))],           # x planes
        out_specs=pl.BlockSpec((TB, HW), lambda i: (i, 0)),
        compiler_params=params,
    )(seed, scale, tv, xf)
    return y.reshape(B, C, H, W)


# ---------------------------------------------------------------------------
# Pure-JAX reference + self-test
# ---------------------------------------------------------------------------

def _keep_mask_reference(seed, bc, H, W, block_size, gamma):
    """Recompute the exact Bernoulli draw the kernels generate internally."""
    HW = H * W
    tv = _thresh_valid(H, W, block_size, gamma)
    gid = jnp.arange(bc * HW, dtype=jnp.int32).reshape(bc, HW)
    return _keep_from_hash(gid, seed[0], tv)


def _dropblock_reference(x, keep_flat, block_size):
    """Pure-JAX reference replicating the PyTorch scatter semantics."""
    B, C, H, W = x.shape
    bc = B * C
    canvas = keep_flat.reshape(bc, H, W)
    written = lax.reduce_window(
        canvas, -jnp.inf, lax.max,
        window_dimensions=(1, block_size, block_size),
        window_strides=(1, 1, 1),
        padding=((0, 0), (block_size - 1, 0), (block_size - 1, 0)))
    block_mask = 1.0 - jnp.maximum(written, 0.0)
    scale = float(bc * H * W) / jnp.sum(block_mask)
    out = (x.reshape(bc, H, W).astype(jnp.float32) * block_mask) * scale
    return out.reshape(B, C, H, W).astype(x.dtype)


def _check_case(key, shape, dtype, gamma, block_size, rtol, atol):
    kx, kd = jax.random.split(key)
    x = jax.random.normal(kx, shape, jnp.float32).astype(dtype)
    out = jax.block_until_ready(
        dropblock(x, gamma, block_size=block_size, key=kd, training=True))
    B, C, H, W = shape
    keep = _keep_mask_reference(_derive_seed(kd), B * C, H, W, block_size, gamma)
    # Sanity: draw is 0/1 and restricted to the valid window.
    k3 = np.asarray(keep).reshape(B * C, H, W)
    Hm, Wm = H - (block_size - 1), W - (block_size - 1)
    assert set(np.unique(k3)).issubset({0.0, 1.0})
    assert k3[:, Hm:, :].sum() == 0.0 and k3[:, :, Wm:].sum() == 0.0
    ref = _dropblock_reference(x, keep, block_size)
    np.testing.assert_allclose(np.asarray(out, dtype=np.float32),
                               np.asarray(ref, dtype=np.float32),
                               rtol=rtol, atol=atol)


if __name__ == "__main__":
    root = jax.random.PRNGKey(0)
    k1, k2, k3 = jax.random.split(root, 3)

    # f32, block_size 3
    _check_case(k1, (2, 4, 16, 16), jnp.float32, 0.1, 3, rtol=1e-5, atol=1e-5)
    # f32, block_size 5 (exercises the log-step H-axis dilation)
    _check_case(k2, (2, 4, 16, 16), jnp.float32, 0.2, 5, rtol=1e-5, atol=1e-5)
    # bf16 input (single final cast inside the fused kernel)
    _check_case(k3, (2, 4, 16, 16), jnp.bfloat16, 0.1, 3, rtol=2e-2, atol=2e-2)

    # Eval mode is identity.
    xe = jax.random.normal(jax.random.PRNGKey(1), (2, 4, 16, 16), jnp.float32)
    assert jnp.array_equal(
        dropblock(xe, 0.1, block_size=3, key=jax.random.PRNGKey(2),
                  training=False), xe)

    print("KERNEL_OK")
</pallas_src>

<mosaic_0001>
module attributes {stable_mosaic.version = 11 : i64} {
  func.func @_count_kernel(%arg0: i32, %arg1: memref<1xi32, #tpu.memory_space<smem>>, %arg2: memref<1x256xi32, #tpu.memory_space<vmem>>, %arg3: memref<1x8x128xf32, #tpu.memory_space<vmem>>) attributes {dimension_semantics = [#tpu.dimension_semantics<parallel>], iteration_bounds = array<i64: 1>, scalar_prefetch = 0 : i64, scratch_operands = 0 : i64, tpu.core_type = #tpu.core_type<tc>, window_params = [{transform_indices = @transform_0, window_bounds = array<i64: 1>}, {pipeline_mode = #tpu.pipeline_mode<synchronous>, transform_indices = @transform_1, window_bounds = array<i64: 1, 256>}, {transform_indices = @transform_2, window_bounds = array<i64: 1, 8, 128>}]} {
    %c2048_i32 = arith.constant 2048 : i32
    %0 = arith.muli %arg0, %c2048_i32 : i32
    %1 = tpu.iota {dimensions = array<i32: 0>} : vector<8x256xi32>
    %2 = tpu.iota {dimensions = array<i32: 1>} : vector<8x256xi32>
    %c256_i32 = arith.constant 256 : i32
    %3 = vector.broadcast %c256_i32 : i32 to vector<8x256xi32>
    %4 = arith.muli %1, %3 : vector<8x256xi32>
    %5 = vector.broadcast %0 : i32 to vector<8x256xi32>
    %6 = arith.addi %5, %4 : vector<8x256xi32>
    %7 = arith.addi %6, %2 : vector<8x256xi32>
    %c0 = arith.constant 0 : index
    %8 = memref.load %arg1[%c0] : memref<1xi32, #tpu.memory_space<smem>>
    %c0_0 = arith.constant 0 : index
    %c0_1 = arith.constant 0 : index
    %9 = vector.load %arg2[%c0_0, %c0_1] : memref<1x256xi32, #tpu.memory_space<vmem>>, vector<1x256xi32>
    %10 = vector.broadcast %8 : i32 to vector<8x256xi32>
    %11 = arith.xori %7, %10 : vector<8x256xi32>
    %c16_i32 = arith.constant 16 : i32
    %12 = vector.broadcast %c16_i32 : i32 to vector<8x256xi32>
    %13 = arith.shrui %11, %12 : vector<8x256xi32>
    %14 = arith.xori %11, %13 : vector<8x256xi32>
    %c-2048144789_i32 = arith.constant -2048144789 : i32
    %15 = vector.broadcast %c-2048144789_i32 : i32 to vector<8x256xi32>
    %16 = arith.muli %14, %15 : vector<8x256xi32>
    %c13_i32 = arith.constant 13 : i32
    %17 = vector.broadcast %c13_i32 : i32 to vector<8x256xi32>
    %18 = arith.shrui %16, %17 : vector<8x256xi32>
    %19 = arith.xori %16, %18 : vector<8x256xi32>
    %c-1028477387_i32 = arith.constant -1028477387 : i32
    %20 = vector.broadcast %c-1028477387_i32 : i32 to vector<8x256xi32>
    %21 = arith.muli %19, %20 : vector<8x256xi32>
    %c16_i32_2 = arith.constant 16 : i32
    %22 = vector.broadcast %c16_i32_2 : i32 to vector<8x256xi32>
    %23 = arith.shrui %21, %22 : vector<8x256xi32>
    %24 = arith.xori %21, %23 : vector<8x256xi32>
    %25 = vector.broadcast %9 : vector<1x256xi32> to vector<8x256xi32>
    %26 = arith.cmpi slt, %24, %25 : vector<8x256xi32>
    %27 = arith.extui %26 : vector<8x256xi1> to vector<8x256xi32>
    %28 = arith.sitofp %27 : vector<8x256xi32> to vector<8x256xf32>
    %cst = arith.constant 0.000000e+00 : f32
    %29 = vector.broadcast %cst : f32 to vector<8x1xf32>
    %30 = tpu.concatenate %29, %28 in 1 : vector<8x1xf32>, vector<8x256xf32> -> vector<8x257xf32>
    %31 = vector.extract_strided_slice %30 {offsets = [0, 0], sizes = [8, 256], strides = [1, 1]} : vector<8x257xf32> to vector<8x256xf32>
    %32 = arith.maximumf %28, %31 : vector<8x256xf32>
    %cst_3 = arith.constant 0.000000e+00 : f32
    %33 = vector.broadcast %cst_3 : f32 to vector<8x2xf32>
    %34 = tpu.concatenate %33, %28 in 1 : vector<8x2xf32>, vector<8x256xf32> -> vector<8x258xf32>
    %35 = vector.extract_strided_slice %34 {offsets = [0, 0], sizes = [8, 256], strides = [1, 1]} : vector<8x258xf32> to vector<8x256xf32>
    %36 = arith.maximumf %32, %35 : vector<8x256xf32>
    %cst_4 = arith.constant 0.000000e+00 : f32
    %37 = vector.broadcast %cst_4 : f32 to vector<8x16xf32>
    %38 = tpu.concatenate %37, %36 in 1 : vector<8x16xf32>, vector<8x256xf32> -> vector<8x272xf32>
    %39 = vector.extract_strided_slice %38 {offsets = [0, 0], sizes = [8, 256], strides = [1, 1]} : vector<8x272xf32> to vector<8x256xf32>
    %40 = arith.maximumf %36, %39 : vector<8x256xf32>
    %cst_5 = arith.constant 0.000000e+00 : f32
    %41 = vector.broadcast %cst_5 : f32 to vector<8x16xf32>
    %42 = tpu.concatenate %41, %40 in 1 : vector<8x16xf32>, vector<8x256xf32> -> vector<8x272xf32>
    %43 = vector.extract_strided_slice %42 {offsets = [0, 0], sizes = [8, 256], strides = [1, 1]} : vector<8x272xf32> to vector<8x256xf32>
    %44 = arith.maximumf %40, %43 : vector<8x256xf32>
    %45 = vector.shape_cast %44 : vector<8x256xf32> to vector<1x8x256xf32>
    %cst_6 = arith.constant dense<0.000000e+00> : vector<1xf32>
    %46 = vector.multi_reduction <add>, %45, %cst_6 [1, 2] : vector<1x8x256xf32> to vector<1xf32>
    %47 = vector.shape_cast %46 : vector<1xf32> to vector<1x1x1xf32>
    %48 = vector.extract %47[0, 0, 0] : f32 from vector<1x1x1xf32>
    %cst_7 = arith.constant 2.048000e+03 : f32
    %49 = arith.subf %cst_7, %48 : f32
    %50 = tpu.iota {dimensions = array<i32: 0>} : vector<8x128xi32>
    %51 = tpu.iota {dimensions = array<i32: 1>} : vector<8x128xi32>
    %c0_i32 = arith.constant 0 : i32
    %52 = vector.broadcast %c0_i32 : i32 to vector<8x128xi32>
    %53 = arith.cmpi eq, %50, %52 : vector<8x128xi32>
    %c0_i32_8 = arith.constant 0 : i32
    %54 = vector.broadcast %c0_i32_8 : i32 to vector<8x128xi32>
    %55 = arith.cmpi eq, %51, %54 : vector<8x128xi32>
    %56 = arith.andi %53, %55 : vector<8x128xi1>
    %cst_9 = arith.constant 0.000000e+00 : f32
    %57 = vector.broadcast %49 : f32 to vector<8x128xf32>
    %58 = vector.broadcast %cst_9 : f32 to vector<8x128xf32>
    %59 = arith.select %56, %57, %58 : vector<8x128xi1>, vector<8x128xf32>
    %60 = vector.shape_cast %59 : vector<8x128xf32> to vector<1x8x128xf32>
    %c0_10 = arith.constant 0 : index
    %c0_11 = arith.constant 0 : index
    %c0_12 = arith.constant 0 : index
    %61 = vector.load %arg3[%c0_10, %c0_11, %c0_12] : memref<1x8x128xf32, #tpu.memory_space<vmem>>, vector<1x8x128xf32>
    tpu.vector_store %arg3[%c0_10, %c0_11, %c0_12], %60 {strides = array<i32>} : memref<1x8x128xf32, #tpu.memory_space<vmem>>, vector<1x8x128xf32>,
    return
  }
  func.func @transform_0(%arg0: i32) -> i32 {
    %c0_i32 = arith.constant 0 : i32
    %c0_i32_0 = arith.constant 0 : i32
    return %c0_i32 : i32
  }
  func.func @transform_1(%arg0: i32) -> (i32, i32) {
    %c0_i32 = arith.constant 0 : i32
    %c0_i32_0 = arith.constant 0 : i32
    %c0_i32_1 = arith.constant 0 : i32
    return %c0_i32, %c0_i32_0 : i32, i32
  }
  func.func @transform_2(%arg0: i32) -> (i32, i32, i32) {
    %c0_i32 = arith.constant 0 : i32
    %c0_i32_0 = arith.constant 0 : i32
    %c0_i32_1 = arith.constant 0 : i32
    return %arg0, %c0_i32, %c0_i32_0 : i32, i32, i32
  }
}

</mosaic_0001>

<bundles_post_ra>
// kernel: tpu_custom_call.1
= control target key start
LH: loop header
LB: loop body
LE: loop exit
PB: predicated region body
PF: predicated region fallthrough
CT: control target
= control target key end

     0   :  { %v14_v0 = vlaneseq  ;;  %s230_s0 = inlined_call_operand.<no memory space> [shape: s32[1], index: 0, kind: input, shape index: {}]   ;;  %s231_s1 = inlined_call_operand.vmem [shape: s32[1,256], index: 1, kind: input, shape index: {}]   ;;  %s232_s2 = inlined_call_operand.hbm [shape: f32[1,8,128], index: 2, kind: output, shape index: {}]  }
   0x1   :  { %8 = vsyncpa [#allocation4], 0  ;;  %v26_v5 = vstv %s230_s0  ;;  %v25_v22 = vld [vmem:[%s231_s1] sm:$0x3]  ;;  %v190_v31 = vmov 0.0   ;;  %s191_s12 = smov 1  }
   0x2   :  { %v210_v1 = vshrl.u32 %v14_v0, 7  ;;  %v212_v2 = vand.u32 127, %v14_v0  ;;  %s192_s13 = smov 2   ;;  %vm65_vm2 = vcmask 7168   ;;  %vm76_vm3 = vcmask 15360   ;;  %s193_s1 = smov 16  }
   0x3   :  { %vm89_vm4 = vcmask 130048   ;;  %s194_s15 = smov [#allocation3]  }
   0x4   :  { %v18_v3 = vadd.s32 128, %v212_v2  ;;  %v19_v4 = vmul.u32 256, %v210_v1  ;;  %v47_v20 = vsub.s32 0, %v210_v1  ;;  %v51_v21 = vsub.s32 1, %v210_v1  ;;  %s131_s16 = sshll.u32 %s194_s15, 4  ;;  %s132_s16 = int_to_ptr.vmem [resolvable:$true] %s131_s16 }
   0x5   :  { %vm119_vm5 = vcmp.eq.s32.totalorder %v210_v1, 0  ;;  %vm120_vm6 = vcmp.eq.s32.totalorder %v212_v2, 0  ;;  %s168_s18 = scalar_lea.vmem %s132_s16, 128  ;;  %p173_p1 = scmp.lt.s32.totalorder %s132_s16, %s132_s16 }
   0x6   :  { %v22_v6 = vadd.s32 %v19_v4, %v212_v2  ;;  %v23_v7 = vadd.s32 %v19_v4, %v18_v3  ;;  %v48_v27 = vrot.slane %v25_v22, %v47_v20  ;;  %v52_v28 = vrot.slane %v25_v22, %v51_v21  ;;  %vm121_vm7 = vmand %vm119_vm5, %vm120_vm6  ;;  %p169_p0 = scmp.ne.s32.totalorder %s132_s16, %s168_s18  ;;  %p174_p2 = scmp.lt.s32.totalorder %s168_s18, %s168_s18 }
   0x8   :  { %v27_v8 = vxor.u32 %v26_v5, %v22_v6  ;;  %v28_v9 = vxor.u32 %v26_v5, %v23_v7  ;;  %p175_p3 = por %p174_p2, %p173_p1 }
   0xa   :  { %v29_v10 = vshrl.u32 %v27_v8, 16  ;;  %v30_v11 = vshrl.u32 %v28_v9, 16  ;;  %p176_p4 = pnand %p175_p3, %p169_p0 }
   0xc   :  { %v31_v12 = vxor.u32 %v29_v10, %v27_v8  ;;  %v32_v13 = vxor.u32 %v30_v11, %v28_v9 }
   0xe   :  { %v33_v14 = vmul.u32 2246822507, %v31_v12  ;;  %v34_v15 = vmul.u32 2246822507, %v32_v13 }
  0x10   :  { %v35_v16 = vshrl.u32 %v33_v14, 13  ;;  %v36_v17 = vshrl.u32 %v34_v15, 13 }
  0x12   :  { %v37_v18 = vxor.u32 %v35_v16, %v33_v14  ;;  %v38_v19 = vxor.u32 %v36_v17, %v34_v15 }
  0x14   :  { %v39_v23 = vmul.u32 3266489909, %v37_v18  ;;  %v40_v24 = vmul.u32 3266489909, %v38_v19 }
  0x16   :  { %v41_v25 = vshrl.u32 %v39_v23, 16  ;;  %v42_v26 = vshrl.u32 %v40_v24, 16 }
  0x18   :  { %v43_v29 = vxor.u32 %v41_v25, %v39_v23  ;;  %v44_v30 = vxor.u32 %v42_v26, %v40_v24 }
  0x1a   :  { %vm53_vm0 = vcmp.lt.s32.totalorder %v43_v29, %v48_v27  ;;  %vm54_vm1 = vcmp.lt.s32.totalorder %v44_v30, %v52_v28 }
  0x1b   :  { %v139_v32 = vsel %vm53_vm0, 1.0, %v190_v31  ;;  %v140_v33 = vsel %vm54_vm1, 1.0, %v190_v31 }
  0x1c   :  { %v148_v34 = vpack.i.bf16 %v140_v33, %v139_v32 }
  0x1e   :  { %149 = vrot.lane.b32.xlu0 %v148_v34, %s191_s12 }
  0x22   :  { %154 = vrot.lane.b32.xlu0 %v148_v34, %s192_s13 }
  0x90   :  { %v150_v35 = vpop.permute.xlu0 %149 }
  0x91   :  { %v152_v36 = vunpack.i.h.bf16 %v150_v35  ;;  %v151_v37 = vunpack.i.l.bf16 %v150_v35 }
  0x93   :  { %v66_v38 = vsel %vm65_vm2, %v151_v37, %v152_v36  ;;  %v69_v39 = vsel %vm65_vm2, 0.0, %v151_v37 }
  0x94   :  { %v155_v40 = vpop.permute.xlu0 %154  ;;  %v70_v43 = vmax.f32 %v139_v32, %v69_v39  ;;  %v71_v44 = vmax.f32 %v140_v33, %v66_v38 }
  0x95   :  { %v157_v41 = vunpack.i.h.bf16 %v155_v40  ;;  %v156_v42 = vunpack.i.l.bf16 %v155_v40 }
  0x97   :  { %v80_v45 = vsel %vm76_vm3, 0.0, %v156_v42  ;;  %v77_v46 = vsel %vm76_vm3, %v156_v42, %v157_v41 }
  0x98   :  { %v81_v47 = vmax.f32 %v70_v43, %v80_v45  ;;  %v82_v48 = vmax.f32 %v71_v44, %v77_v46 }
  0x9a   :  { %v158_v49 = vpack.i.bf16 %v82_v48, %v81_v47 }
  0x9c   :  { %159 = vrot.lane.b32.xlu1 %v158_v49, %s193_s1 }
 0x10e   :  { %v160_v50 = vpop.permute.xlu1 %159 }
 0x10f   :  { %v162_v51 = vunpack.i.h.bf16 %v160_v50  ;;  %v161_v52 = vunpack.i.l.bf16 %v160_v50 }
 0x111   :  { %v90_v53 = vsel %vm89_vm4, %v161_v52, %v162_v51  ;;  %v93_v54 = vsel %vm89_vm4, 0.0, %v161_v52 }
 0x112   :  { %v94_v55 = vmax.f32 %v81_v47, %v93_v54  ;;  %v95_v56 = vmax.f32 %v82_v48, %v90_v53 }
 0x114   :  { %v163_v57 = vpack.i.bf16 %v95_v56, %v94_v55 }
 0x116   :  { %164 = vrot.lane.b32.xlu1 %v163_v57, %s193_s1 }
 0x188   :  { %v165_v58 = vpop.permute.xlu1 %164 }
 0x189   :  { %v167_v59 = vunpack.i.h.bf16 %v165_v58  ;;  %v166_v60 = vunpack.i.l.bf16 %v165_v58 }
 0x18b   :  { %v105_v61 = vsel %vm89_vm4, 0.0, %v166_v60  ;;  %v102_v62 = vsel %vm89_vm4, %v166_v60, %v167_v59 }
 0x18c   :  { %v106_v63 = vmax.f32 %v94_v55, %v105_v61  ;;  %v107_v0 = vmax.f32 %v95_v56, %v102_v62 }
 0x18e   :  { %v108_v3 = vadd.f32 %v107_v0, %v106_v63 }
 0x190   :  { %109 = vadd.xlane.f32.xlu0 %v108_v3 }
 0x219   :  { %v110_v4 = vpop.xlane.xlu0 %109 }
 0x21a   :  { %v111_v5 = vrot.slane %v110_v4, 4 }
 0x21c   :  { %v112_v6 = vadd.f32 %v111_v5, %v110_v4 }
 0x21e   :  { %v113_v7 = vrot.slane %v112_v6, 2 }
 0x220   :  { %v114_v8 = vadd.f32 %v113_v7, %v112_v6 }
 0x222   :  { %v115_v9 = vrot.slane %v114_v8, 1 }
 0x224   :  { %v116_v10 = vadd.f32 %v115_v9, %v114_v8 }
 0x226   :  { %141 = vpush %v116_v10 }
 0x257   :  { %s142_s14 = spop %141 }
 0x258   :  { %s118_s17 = ssub.f32 2048.0, %s142_s14 }
 0x25a   :  { %v122_v11 = vstv %s118_s17 }
 0x25b   :  { %v123_v12 = vsel %vm121_vm7, %v122_v11, 0.0 }
 0x25c   :  { %124 = vst [vmem:[#allocation3] sm:$0xff] %v123_v12 }
 0x25d   :  { %179 = shalt.err (!%p176_p4)
}
 0x25e   :  { %134 = dma.vmem_to_hbm [thread:$0]  %s132_s16, 128, %s232_s2, [#allocation4]  }
 0x25f   :  { %188 = dma.done.wait [#allocation4], 128  }
 0x260   :  { %189 = vsyncadd [#allocation4], 4294967168 }
 0x261   :  { %138 = vsyncpa [#allocation4], 1 }

</bundles_post_ra>
